<compile_context>
chip_gen: v7x
topology: tpu7x:2x2x1
jax: 0.10.0
libtpu: 0.0.40
codegen_flags: <defaults>
</compile_context>

<pallas_src>
import jax
import jax.numpy as jnp
from jax.experimental import pallas as pl
from jax.experimental.pallas import tpu as pltpu

SR = 1000              # len(range(500, 1500))
D_IN = SR * 2          # 2000 (kept UNPADDED: full-array block on the K dim)
HN = SR * 2 * 1        # 2000
H = HN // 8            # 250
D_OUT = 2
BN_EPS = 1e-5

# Lane-aligned padded sizes used inside the kernel.
H_P = 256              # hidden channels padded to a multiple of 128
D_OUT_P = 128          # output lanes padded for unmasked vst stores
TH = 128               # hidden-slab width per grid step (== D_OUT_P)
N_SLABS = H_P // TH    # grid size (2)


def classifier_kernel(x_ref, w1_ref, p_ref, w2_ref, o_ref, acc_ref):
    """One 128-channel slab of the hidden layer per grid step.

    x_ref  : (B, 2000)  f32   (constant index_map -> DMA'd once)
    w1_ref : (2000, 128) bf16  (column slab j of padded w1)
    p_ref  : (8, 128)   f32    rows: 0=b1, 1=gamma, 2=beta, 3=b2(@slab 0)
    w2_ref : (128, 128) bf16   (row slab j of padded w2)
    o_ref  : (B, 128)   f32    (constant index_map -> written on last step)
    acc_ref: (B, 128)   f32    linear2 accumulator (VMEM scratch)
    """
    j = pl.program_id(0)

    @pl.when(j == 0)
    def _init():
        # Fold the linear2 bias into the accumulator (row 3 of the packed
        # params at slab 0 holds b2, zero padded).
        acc_ref[...] = jnp.broadcast_to(p_ref[3:4, :], acc_ref.shape)

    # ---- linear1 slab + bias + ReLU: bf16 MXU matmul, f32 accumulation -----
    xb = x_ref[...].astype(jnp.bfloat16)                     # in-kernel cast
    h = jnp.dot(xb, w1_ref[...],
                preferred_element_type=jnp.float32)          # (B, TH) f32
    h = jnp.maximum(h + p_ref[0:1, :], 0.0)

    # ---- BatchNorm1d (training mode: full-batch stats, biased variance) ----
    # One-pass statistics: var = E[h^2] - mean^2 (clamped), folded affine.
    inv_b = 1.0 / h.shape[0]
    s = jnp.sum(h, axis=0, keepdims=True)                    # (1, TH)
    sq = jnp.sum(h * h, axis=0, keepdims=True)               # (1, TH)
    mean = s * inv_b
    var = jnp.maximum(sq * inv_b - mean * mean, 0.0)
    scale = p_ref[1:2, :] * jax.lax.rsqrt(var + BN_EPS)      # gamma * rsqrt
    shift = p_ref[2:3, :] - mean * scale                     # beta - mean*scale
    h_bn = h * scale + shift

    # ---- linear2 partial product for this slab (bf16 MXU, f32 accumulate) --
    acc_ref[...] += jnp.dot(h_bn.astype(jnp.bfloat16), w2_ref[...],
                            preferred_element_type=jnp.float32)

    @pl.when(j == pl.num_programs(0) - 1)
    def _finalize():
        o_ref[...] = jnp.maximum(acc_ref[...], 0.0).astype(o_ref.dtype)


def _pad2(a, rows, cols):
    r, c = a.shape
    return jnp.pad(a, ((0, rows - r), (0, cols - c)))


def prepare_classifier_params(w1, b1, gamma, beta, w2, b2):
    """Pad / pack / cast the parameters ONCE (hoisted out of the hot path).

    w1: (2000, 250), w2: (250, 2)  (transposed vs. torch's (out, in) layout);
    b1/gamma/beta: (1, 250); b2: (1, 2).
    Returns (w1_p bf16 (2000, 256), params_p f32 (8, 256), w2_p bf16 (256, 128)).
    Zero padding keeps the math exact: padded hidden channels have
    gamma=beta=0 -> h_bn=0, and padded w2 rows/cols are 0.
    """
    w1_p = _pad2(w1, D_IN, H_P).astype(jnp.bfloat16)          # K kept at 2000
    w2_p = _pad2(w2, H_P, D_OUT_P).astype(jnp.bfloat16)
    p = jnp.zeros((8, H_P), jnp.float32)
    p = p.at[0, :H].set(jnp.reshape(b1, (-1,)).astype(jnp.float32))
    p = p.at[1, :H].set(jnp.reshape(gamma, (-1,)).astype(jnp.float32))
    p = p.at[2, :H].set(jnp.reshape(beta, (-1,)).astype(jnp.float32))
    p = p.at[3, :D_OUT].set(jnp.reshape(b2, (-1,)).astype(jnp.float32))
    return w1_p, p, w2_p


def classifier_forward(x, w1_p, params_p, w2_p):
    """x: (B, 2000) f32 (unpadded). Params from prepare_classifier_params."""
    B = x.shape[0]
    assert TH == D_OUT_P  # b2 packing / acc-init relies on this

    cost = pl.CostEstimate(
        flops=2 * B * (D_IN * H_P + H_P * D_OUT_P),
        transcendentals=H_P,                       # rsqrt per hidden channel
        bytes_accessed=(B * D_IN * 4 + D_IN * H_P * 2 + 8 * H_P * 4
                        + H_P * D_OUT_P * 2 + B * D_OUT_P * 4),
    )

    out = pl.pallas_call(
        classifier_kernel,
        out_shape=jax.ShapeDtypeStruct((B, D_OUT_P), jnp.float32),
        grid=(N_SLABS,),
        in_specs=[
            pl.BlockSpec((B, D_IN), lambda j: (0, 0)),       # x (f32, whole)
            pl.BlockSpec((D_IN, TH), lambda j: (0, j)),      # w1 column slab
            pl.BlockSpec((8, TH), lambda j: (0, j)),         # packed params
            pl.BlockSpec((TH, D_OUT_P), lambda j: (j, 0)),   # w2 row slab
        ],
        out_specs=pl.BlockSpec((B, D_OUT_P), lambda j: (0, 0)),
        scratch_shapes=[pltpu.VMEM((B, D_OUT_P), jnp.float32)],
        compiler_params=pltpu.CompilerParams(
            dimension_semantics=("arbitrary",),   # reduction into acc/out
            # v7x has only 64 MiB physical VMEM; keep the scoped limit at
            # 48 MiB so the same code runs on every generation.
            vmem_limit_bytes=48 * 1024 * 1024),
        cost_estimate=cost,
    )(x, w1_p, params_p, w2_p)

    return out[:, :D_OUT]


# ----------------------------- references -----------------------------------

def reference_forward_f32(x, w1, b1, gamma, beta, w2, b2):
    h = jnp.maximum(x @ w1 + b1, 0.0)
    mean = jnp.mean(h, axis=0, keepdims=True)
    var = jnp.mean((h - mean) ** 2, axis=0, keepdims=True)
    h = (h - mean) / jnp.sqrt(var + BN_EPS) * gamma + beta
    return jnp.maximum(h @ w2 + b2, 0.0)


def reference_forward_matched(x, w1, b1, gamma, beta, w2, b2):
    # Same math as the kernel (bf16 matmuls, f32 accumulation, one-pass BN).
    h = jnp.dot(x.astype(jnp.bfloat16), w1.astype(jnp.bfloat16),
                preferred_element_type=jnp.float32)
    h = jnp.maximum(h + b1, 0.0)
    mean = jnp.mean(h, axis=0, keepdims=True)
    var = jnp.maximum(jnp.mean(h * h, axis=0, keepdims=True) - mean * mean, 0.0)
    scale = gamma * jax.lax.rsqrt(var + BN_EPS)
    shift = beta - mean * scale
    h = h * scale + shift
    y = jnp.dot(h.astype(jnp.bfloat16), w2.astype(jnp.bfloat16),
                preferred_element_type=jnp.float32) + b2
    return jnp.maximum(y, 0.0)


if __name__ == "__main__":
    key = jax.random.PRNGKey(0)
    kx, k1, kb1, k2, kb2, kg, kb = jax.random.split(key, 7)

    B = 16  # small batch; feature dims are fixed by the module definition

    x = jax.random.normal(kx, (B, D_IN), dtype=jnp.float32)

    # Deterministic synthetic parameters (shapes match the nn.Module layers,
    # stored as (in, out), i.e. transposed vs. torch's (out, in)).
    w1 = jax.random.normal(k1, (D_IN, H), dtype=jnp.float32) * (1.0 / jnp.sqrt(D_IN))
    b1 = jax.random.normal(kb1, (1, H), dtype=jnp.float32) * 0.01
    gamma = 1.0 + 0.1 * jax.random.normal(kg, (1, H), dtype=jnp.float32)
    beta = 0.05 * jax.random.normal(kb, (1, H), dtype=jnp.float32)
    w2 = jax.random.normal(k2, (H, D_OUT), dtype=jnp.float32) * (1.0 / jnp.sqrt(H))
    b2 = jax.random.normal(kb2, (1, D_OUT), dtype=jnp.float32) * 0.01

    # Hoisted parameter prep: done once, reused for every forward call.
    w1_p, params_p, w2_p = prepare_classifier_params(w1, b1, gamma, beta, w2, b2)
    w1_p, params_p, w2_p = jax.block_until_ready((w1_p, params_p, w2_p))

    out = classifier_forward(x, w1_p, params_p, w2_p)
    out = jax.block_until_ready(out)
    assert out.shape == (B, D_OUT)

    # Tight check vs. a precision-matched (bf16 matmul) reference.
    ref_m = reference_forward_matched(x, w1, b1, gamma, beta, w2, b2)
    assert jnp.allclose(out, ref_m, atol=3e-3, rtol=3e-3), \
        "mismatch vs matched-precision reference"

    # Loose check vs. the full-f32 reference (bf16 quantization error).
    ref_f32 = reference_forward_f32(x, w1, b1, gamma, beta, w2, b2)
    assert jnp.allclose(out, ref_f32, atol=5e-2, rtol=5e-2), \
        "mismatch vs f32 reference"

    print("KERNEL_OK")
</pallas_src>

<mosaic_0001>
module attributes {stable_mosaic.version = 11 : i64} {
  func.func @classifier_kernel(%arg0: i32, %arg1: memref<16x2000xf32, #tpu.memory_space<vmem>>, %arg2: memref<2000x128xbf16, #tpu.memory_space<vmem>>, %arg3: memref<8x128xf32, #tpu.memory_space<vmem>>, %arg4: memref<128x128xbf16, #tpu.memory_space<vmem>>, %arg5: memref<16x128xf32, #tpu.memory_space<vmem>>, %arg6: memref<16x128xf32, #tpu.memory_space<vmem>>) attributes {dimension_semantics = [#tpu.dimension_semantics<arbitrary>], iteration_bounds = array<i64: 2>, scalar_prefetch = 0 : i64, scratch_operands = 1 : i64, tpu.core_type = #tpu.core_type<tc>, window_params = [{pipeline_mode = #tpu.pipeline_mode<synchronous>, transform_indices = @transform_0, window_bounds = array<i64: 16, 2000>}, {transform_indices = @transform_1, window_bounds = array<i64: 2000, 128>}, {transform_indices = @transform_2, window_bounds = array<i64: 8, 128>}, {transform_indices = @transform_3, window_bounds = array<i64: 128, 128>}, {pipeline_mode = #tpu.pipeline_mode<synchronous>, transform_indices = @transform_4, window_bounds = array<i64: 16, 128>}]} {
    %c0_i32 = arith.constant 0 : i32
    %0 = arith.cmpi eq, %arg0, %c0_i32 : i32
    %1 = arith.extui %0 : i1 to i32
    %c0_i32_0 = arith.constant 0 : i32
    %2 = arith.cmpi ne, %1, %c0_i32_0 : i32
    scf.if %2 {
      %c3 = arith.constant 3 : index
      %c0_23 = arith.constant 0 : index
      %46 = vector.load %arg3[%c3, %c0_23] : memref<8x128xf32, #tpu.memory_space<vmem>>, vector<1x128xf32>
      %47 = vector.shape_cast %46 : vector<1x128xf32> to vector<1x128xf32>
      %48 = vector.broadcast %47 : vector<1x128xf32> to vector<16x128xf32>
      %c0_24 = arith.constant 0 : index
      %c0_25 = arith.constant 0 : index
      %49 = vector.load %arg6[%c0_24, %c0_25] : memref<16x128xf32, #tpu.memory_space<vmem>>, vector<16x128xf32>
      tpu.vector_store %arg6[%c0_24, %c0_25], %48 {strides = array<i32>} : memref<16x128xf32, #tpu.memory_space<vmem>>, vector<16x128xf32>,
    } else {
    }
    %c0 = arith.constant 0 : index
    %c0_1 = arith.constant 0 : index
    %3 = vector.load %arg1[%c0, %c0_1] : memref<16x2000xf32, #tpu.memory_space<vmem>>, vector<16x2000xf32>
    %4 = arith.truncf %3 : vector<16x2000xf32> to vector<16x2000xbf16>
    %c0_2 = arith.constant 0 : index
    %c0_3 = arith.constant 0 : index
    %5 = vector.load %arg2[%c0_2, %c0_3] : memref<2000x128xbf16, #tpu.memory_space<vmem>>, vector<2000x128xbf16>
    %cst = arith.constant dense<0.000000e+00> : vector<16x128xf32>
    %6 = tpu.matmul %4, %5, %cst {dimension_numbers = #tpu.dot_dimension_numbers<[1], [0], [0], [1], [0, 0, 1, 1], [], []>} : vector<16x2000xbf16>, vector<2000x128xbf16>, vector<16x128xf32> -> vector<16x128xf32>
    %c0_4 = arith.constant 0 : index
    %c0_5 = arith.constant 0 : index
    %7 = vector.load %arg3[%c0_4, %c0_5] : memref<8x128xf32, #tpu.memory_space<vmem>>, vector<1x128xf32>
    %8 = vector.broadcast %7 : vector<1x128xf32> to vector<16x128xf32>
    %9 = arith.addf %6, %8 : vector<16x128xf32>
    %cst_6 = arith.constant 0.000000e+00 : f32
    %10 = vector.broadcast %cst_6 : f32 to vector<16x128xf32>
    %11 = arith.maximumf %9, %10 : vector<16x128xf32>
    %cst_7 = arith.constant dense<0.000000e+00> : vector<128xf32>
    %12 = vector.multi_reduction <add>, %11, %cst_7 [0] : vector<16x128xf32> to vector<128xf32>
    %13 = vector.shape_cast %12 : vector<128xf32> to vector<1x128xf32>
    %14 = arith.mulf %11, %11 : vector<16x128xf32>
    %cst_8 = arith.constant dense<0.000000e+00> : vector<128xf32>
    %15 = vector.multi_reduction <add>, %14, %cst_8 [0] : vector<16x128xf32> to vector<128xf32>
    %16 = vector.shape_cast %15 : vector<128xf32> to vector<1x128xf32>
    %cst_9 = arith.constant 6.250000e-02 : f32
    %17 = vector.broadcast %cst_9 : f32 to vector<1x128xf32>
    %18 = arith.mulf %13, %17 : vector<1x128xf32>
    %cst_10 = arith.constant 6.250000e-02 : f32
    %19 = vector.broadcast %cst_10 : f32 to vector<1x128xf32>
    %20 = arith.mulf %16, %19 : vector<1x128xf32>
    %21 = arith.mulf %18, %18 : vector<1x128xf32>
    %22 = arith.subf %20, %21 : vector<1x128xf32>
    %cst_11 = arith.constant 0.000000e+00 : f32
    %23 = vector.broadcast %cst_11 : f32 to vector<1x128xf32>
    %24 = arith.maximumf %22, %23 : vector<1x128xf32>
    %c1 = arith.constant 1 : index
    %c0_12 = arith.constant 0 : index
    %25 = vector.load %arg3[%c1, %c0_12] : memref<8x128xf32, #tpu.memory_space<vmem>>, vector<1x128xf32>
    %cst_13 = arith.constant 9.99999974E-6 : f32
    %26 = vector.broadcast %cst_13 : f32 to vector<1x128xf32>
    %27 = arith.addf %24, %26 : vector<1x128xf32>
    %28 = math.rsqrt %27 : vector<1x128xf32>
    %29 = arith.mulf %25, %28 : vector<1x128xf32>
    %c2 = arith.constant 2 : index
    %c0_14 = arith.constant 0 : index
    %30 = vector.load %arg3[%c2, %c0_14] : memref<8x128xf32, #tpu.memory_space<vmem>>, vector<1x128xf32>
    %31 = arith.mulf %18, %29 : vector<1x128xf32>
    %32 = arith.subf %30, %31 : vector<1x128xf32>
    %33 = vector.broadcast %29 : vector<1x128xf32> to vector<16x128xf32>
    %34 = arith.mulf %11, %33 : vector<16x128xf32>
    %35 = vector.broadcast %32 : vector<1x128xf32> to vector<16x128xf32>
    %36 = arith.addf %34, %35 : vector<16x128xf32>
    %c0_15 = arith.constant 0 : index
    %c0_16 = arith.constant 0 : index
    %37 = vector.load %arg6[%c0_15, %c0_16] : memref<16x128xf32, #tpu.memory_space<vmem>>, vector<16x128xf32>
    %38 = arith.truncf %36 : vector<16x128xf32> to vector<16x128xbf16>
    %c0_17 = arith.constant 0 : index
    %c0_18 = arith.constant 0 : index
    %39 = vector.load %arg4[%c0_17, %c0_18] : memref<128x128xbf16, #tpu.memory_space<vmem>>, vector<128x128xbf16>
    %cst_19 = arith.constant dense<0.000000e+00> : vector<16x128xf32>
    %40 = tpu.matmul %38, %39, %cst_19 {dimension_numbers = #tpu.dot_dimension_numbers<[1], [0], [0], [1], [0, 0, 1, 1], [], []>} : vector<16x128xbf16>, vector<128x128xbf16>, vector<16x128xf32> -> vector<16x128xf32>
    %41 = arith.addf %37, %40 : vector<16x128xf32>
    %c0_20 = arith.constant 0 : index
    %c0_21 = arith.constant 0 : index
    %42 = vector.load %arg6[%c0_20, %c0_21] : memref<16x128xf32, #tpu.memory_space<vmem>>, vector<16x128xf32>
    tpu.vector_store %arg6[%c0_20, %c0_21], %41 {strides = array<i32>} : memref<16x128xf32, #tpu.memory_space<vmem>>, vector<16x128xf32>,
    %c1_i32 = arith.constant 1 : i32
    %43 = arith.cmpi eq, %arg0, %c1_i32 : i32
    %44 = arith.extui %43 : i1 to i32
    %c0_i32_22 = arith.constant 0 : i32
    %45 = arith.cmpi ne, %44, %c0_i32_22 : i32
    scf.if %45 {
      %c0_23 = arith.constant 0 : index
      %c0_24 = arith.constant 0 : index
      %46 = vector.load %arg6[%c0_23, %c0_24] : memref<16x128xf32, #tpu.memory_space<vmem>>, vector<16x128xf32>
      %cst_25 = arith.constant 0.000000e+00 : f32
      %47 = vector.broadcast %cst_25 : f32 to vector<16x128xf32>
      %48 = arith.maximumf %46, %47 : vector<16x128xf32>
      %c0_26 = arith.constant 0 : index
      %c0_27 = arith.constant 0 : index
      %49 = vector.load %arg5[%c0_26, %c0_27] : memref<16x128xf32, #tpu.memory_space<vmem>>, vector<16x128xf32>
      tpu.vector_store %arg5[%c0_26, %c0_27], %48 {strides = array<i32>} : memref<16x128xf32, #tpu.memory_space<vmem>>, vector<16x128xf32>,
    } else {
    }
    return
  }
  func.func @transform_0(%arg0: i32) -> (i32, i32) {
    %c0_i32 = arith.constant 0 : i32
    %c0_i32_0 = arith.constant 0 : i32
    %c0_i32_1 = arith.constant 0 : i32
    return %c0_i32, %c0_i32_0 : i32, i32
  }
  func.func @transform_1(%arg0: i32) -> (i32, i32) {
    %c0_i32 = arith.constant 0 : i32
    %c0_i32_0 = arith.constant 0 : i32
    return %c0_i32, %arg0 : i32, i32
  }
  func.func @transform_2(%arg0: i32) -> (i32, i32) {
    %c0_i32 = arith.constant 0 : i32
    %c0_i32_0 = arith.constant 0 : i32
    return %c0_i32, %arg0 : i32, i32
  }
  func.func @transform_3(%arg0: i32) -> (i32, i32) {
    %c0_i32 = arith.constant 0 : i32
    %c0_i32_0 = arith.constant 0 : i32
    return %arg0, %c0_i32 : i32, i32
  }
  func.func @transform_4(%arg0: i32) -> (i32, i32) {
    %c0_i32 = arith.constant 0 : i32
    %c0_i32_0 = arith.constant 0 : i32
    %c0_i32_1 = arith.constant 0 : i32
    return %c0_i32, %c0_i32_0 : i32, i32
  }
}

</mosaic_0001>

<bundles_post_ra>
// kernel: tpu_custom_call.1
= control target key start
LH: loop header
LB: loop body
LE: loop exit
PB: predicated region body
PF: predicated region fallthrough
CT: control target
= control target key end

     0   :  { %9 = vsyncpa [#allocation4], 0  ;;  %s3164_s0 = inlined_call_operand.hbm [shape: f32[16,2000], index: 0, kind: input, shape index: {}]   ;;  %s3165_s1 = inlined_call_operand.hbm [shape: bf16[2000,256], index: 1, kind: input, shape index: {}]   ;;  %s3166_s2 = inlined_call_operand.hbm [shape: f32[8,256], index: 2, kind: input, shape index: {}]   ;;  %s3167_s3 = inlined_call_operand.hbm [shape: bf16[256,128], index: 3, kind: input, shape index: {}]   ;;  %s3168_s4 = inlined_call_operand.hbm [shape: f32[16,128], index: 4, kind: output, shape index: {}]  }
   0x1   :  { %10 = vsyncpa [#allocation7], 0 }
   0x2   :  { %12 = vsyncpa [#allocation7 + $0x1], 0 }
   0x3   :  { %13 = vsyncpa [#allocation10], 0 }
   0x4   :  { %15 = vsyncpa [#allocation10 + $0x1], 0 }
   0x5   :  { %16 = vsyncpa [#allocation5], 0  ;;  %s2752_s15 = smov 0   ;;  %s2754_s16 = smov 0  }
   0x6   :  { %s2756_s17 = smov 0   ;;  %s2758_s18 = smov 0  }
   0x7 LB: > { %s2773_s19 = sadd.s32 1, %s2711_s18   ;;  %s50_s20 = sadd.s32 1, %s2707_s17  ;;  %s2711_s18 = sphi %s2758_s18, %s3197_s18   ;;  %s2707_s17 = sphi %s2756_s17, %s3196_s17   ;;  %s2703_s16 = sphi %s2754_s16, %s3195_s16   ;;  %s2699_s15 = sphi %s2752_s15, %s3194_s15  }
   0x8   : > { %s47_s21 = ssub.s32 %s2711_s18, %s2773_s19  ;;  %p57_p0 = scmp.ne.s32.totalorder %s2707_s17, %s2703_s16 }
   0x9   : > { %p48_p1 = scmp.eq.s32.totalorder %s47_s21, 0  ;;  %p58_p2 = scmp.eq.s32.totalorder %s2711_s18, 0 }
   0xa   : > { %p2339_p4 = scmp.lt.s32.totalorder %s2711_s18, 2  ;;  %s173_s23 = sand.u32 1, %s2711_s18  }
   0xb   : > { %s2782_s22 = scalar_select %p48_p1, %s2707_s17, %s50_s20  }
   0xc   : > { %p59_p3 = por %p58_p2, %p57_p0  ;;  %s2787_s24 = sand.u32 1, %s2707_s17  }
   0xd   : > { %s2308_s25 = smul.u32 1000, %s2787_s24  ;;  %s1972_s26 = sshll.u32 %s2711_s18, 6 }
   0xe   : > { %p2791_p5 = pnand %p2339_p4, %p59_p3  ;;  %s2798_s30 = scalar_lea.hbm %s3165_s1, %s1972_s26 }
   0xf   : > { %s177_s5 = scalar_lea.vmem [#allocation6], %s2308_s25  ;;  %s2802_s7 = scalar_lea.sflag [#allocation7], %s173_s23 }
  0x10   : > { %s3179_s27 = scalar_select %p2791_p5, 1, 0 }
  0x11   : > { %s183_s6 = sshll.u32 %s177_s5, 4  ;;  %s2521_s8 = scalar_lea.hbm %s2798_s30, 16000  ;;  %s2800_s6 = int_to_ptr.vmem [resolvable:$true] %s183_s6 }
  0x12   : > { %p2522_p6 = scmp.ne.s32.totalorder %s2798_s30, %s2521_s8  ;;  %p2808_p7 = pneg %p2791_p5 }
  0x13   : > { %s2526_s12 = scalar_lea.hbm %s3165_s1, 32000  ;;  %p2527_p10 = scmp.lt.u32.totalorder %s2798_s30, %s3165_s1 }
  0x14   : > { %s3180_s9 = scalar_select %p2808_p7, 1, 0 }
  0x15   : > { %p2524_p8 = pnand %p2808_p7, %p2522_p6  ;;  %p2528_p11 = scmp.lt.u32.totalorder %s2526_s12, %s2521_s8 }
  0x16   : > { %p2530_p13 = scmp.lt.u32.totalorder %s2521_s8, %s2798_s30 }
  0x17   : > { %p2525_p9 = pneg %p2524_p8  ;;  %p2529_p12 = por %p2528_p11, %p2527_p10 }
  0x19   : > { %p2531_p0 = por %p2530_p13, %p2529_p12 }
  0x1b   : > { %p2532_p1 = pnand %p2531_p0, %p2525_p9 }
  0x1d   : > { %2535 = shalt.err (!%p2532_p1)
}
  0x1e   : > { %s2536_s20 = scalar_lea.vmem %s2800_s6, 16000  ;;  %s2713_s21 = smov [#allocation6]  }
  0x1f   : > { %p2537_p2 = scmp.ne.s32.totalorder %s2800_s6, %s2536_s20  ;;  %s2541_s23 = sshll.u32 %s2713_s21, 4  ;;  %s2542_s23 = int_to_ptr.vmem [resolvable:$false] %s2541_s23 }
  0x20   : > { %s2543_s25 = scalar_lea.vmem %s2542_s23, 32000  ;;  %p2544_p6 = scmp.lt.s32.totalorder %s2800_s6, %s2542_s23 }
  0x21   : > { %p2539_p3 = pnand %p2537_p2, %p2808_p7  ;;  %p2545_p8 = scmp.lt.s32.totalorder %s2543_s25, %s2536_s20 }
  0x23   : > { %p2540_p4 = pneg %p2539_p3  ;;  %p2546_p10 = por %p2545_p8, %p2544_p6 }
  0x25   : > { %p2547_p11 = pnand %p2546_p10, %p2540_p4 }
  0x27   : > { %2550 = shalt.err (!%p2547_p11)
}
  0x28   : > { %s3171_s26 = smov 128   ;;  %s3169_s28 = smov 64  }
  0x29   : > { %s3170_s29 = smov 4   ;;  %s2836_s5 = sadd.s32 4294967295, %s2711_s18  }
  0x2a   : > { %2331 = dma.hbm_to_vmem [thread:$0]  (!%p2791_p5), %s2798_s30, 16000, %s2800_s6, %s2802_s7, %s3171_s26, %s3169_s28, %s3170_s29  }
  0x2b   : > { %p63_p9 = scmp.ne.s32.totalorder %s2703_s16, %s2699_s15  ;;  %p3172_p12 = scmp.eq.s32.totalorder %s2836_s5, 0 }
  0x2c   : > { %p1969_p13 = scmp.ge.s32.totalorder %s2711_s18, 1  ;;  %p147_p0 = scmp.lt.s32.totalorder %s2711_s18, 3 }
  0x2d   : > { %p2845_p1 = por %p3172_p12, %p63_p9  ;;  %s2717_s30 = smov [#allocation3]  }
  0x2e   : > { %p2850_p3 = pnand %p1969_p13, %p147_p0  ;;  %s159_s6 = sshll.u32 %s2717_s30, 4  ;;  %s2856_s6 = int_to_ptr.vmem [resolvable:$true] %s159_s6 }
  0x2f   : > { %s3181_s8 = scalar_select %p2845_p1, 1, 0 }
  0x30   : > { %s3182_s10 = scalar_select %p2850_p3, 1, 0 }
  0x31   : > { %p2324_p4 = pneg %p2850_p3  ;;  %s1973_s15 = sshll.u32 %s2787_s24, 3 }
  0x32   : > { %s1974_s11 = sshll.u32 %s2711_s18, 7  ;;  %s197_s21 = scalar_lea.vmem [#allocation8], %s1973_s15 }
  0x33   : > { %p2862_p6 = pnand %p2324_p4, %p3172_p12  ;;  %s2869_s20 = scalar_lea.hbm %s3166_s2, %s1974_s11 }
  0x34   : > { %s204_s23 = sshll.u32 %s197_s21, 4  ;;  %s2551_s28 = scalar_lea.hbm %s3164_s0, 4096  ;;  %s2871_s23 = int_to_ptr.vmem [resolvable:$true] %s204_s23 }
  0x35   : > { %p2552_p8 = scmp.ne.s32.totalorder %s3164_s0, %s2551_s28  ;;  %p2553_p10 = pneg %p2862_p6 }
  0x36   : > { %p2558_p13 = scmp.lt.u32.totalorder %s2551_s28, %s3164_s0 }
  0x37   : > { %p2554_p11 = pnand %p2553_p10, %p2552_p8 }
  0x39   : > { %p2555_p9 = pneg %p2554_p11 }
  0x3b   : > { %p2560_p0 = pnand %p2558_p13, %p2555_p9 }
  0x3d   : > { %2563 = shalt.err (!%p2560_p0)
}
  0x3e   : > { %s2564_s15 = scalar_lea.vmem %s2856_s6, 4096  ;;  %p2572_p1 = scmp.lt.s32.totalorder %s2856_s6, %s2856_s6 }
  0x3f   : > { %p2565_p4 = scmp.ne.s32.totalorder %s2856_s6, %s2564_s15  ;;  %p2573_p3 = scmp.lt.s32.totalorder %s2564_s15, %s2564_s15 }
  0x41   : > { %p2567_p2 = pnand %p2565_p4, %p2553_p10  ;;  %p2574_p5 = por %p2573_p3, %p2572_p1 }
  0x43   : > { %p2568_p12 = pneg %p2567_p2 }
  0x45   : > { %p2575_p7 = pnand %p2574_p5, %p2568_p12 }
  0x47   : > { %2578 = shalt.err (!%p2575_p7)
}
  0x48   : > { %s2718_s26 = smov 2048   ;;  %s3184_s29 = smov 128  }
  0x49   : > { %2327 = dma.hbm_to_vmem [thread:$0]  (!%p2862_p6), %s3164_s0, 4096, %s2856_s6, [#allocation4], %s2718_s26, %s2718_s26, %s3184_s29  }
  0x4a   : > { %s2579_s21 = scalar_lea.hbm %s2869_s20, 128  ;;  %p3185_p8 = scmp.ne.s32.totalorder %s3180_s9, 0 }
  0x4b   : > { %p2580_p2 = scmp.ne.s32.totalorder %s2869_s20, %s2579_s21  ;;  %s2584_s12 = scalar_lea.hbm %s3166_s2, 256 }
  0x4c   : > { %p2585_p7 = scmp.lt.u32.totalorder %s2869_s20, %s3166_s2  ;;  %p2586_p12 = scmp.lt.u32.totalorder %s2584_s12, %s2579_s21 }
  0x4d   : > { %p2582_p1 = pnand %p2580_p2, %p3185_p8  ;;  %p2588_p10 = scmp.lt.u32.totalorder %s2579_s21, %s2869_s20 }
  0x4e   : > { %p2587_p3 = por %p2586_p12, %p2585_p7 }
  0x4f   : > { %p2583_p5 = pneg %p2582_p1 }
  0x50   : > { %p2589_p11 = por %p2588_p10, %p2587_p3 }
  0x52   : > { %p2590_p9 = pnand %p2589_p11, %p2583_p5 }
  0x54   : > { %2593 = shalt.err (!%p2590_p9)
}
  0x55   : > { %s2594_s6 = scalar_lea.vmem %s2871_s23, 128  ;;  %s2719_s15 = smov [#allocation8]  }
  0x56   : > { %p2595_p6 = scmp.ne.s32.totalorder %s2871_s23, %s2594_s6  ;;  %s2599_s26 = sshll.u32 %s2719_s15, 4  ;;  %s2600_s26 = int_to_ptr.vmem [resolvable:$false] %s2599_s26 }
  0x57   : > { %s2601_s29 = scalar_lea.vmem %s2600_s26, 256  ;;  %p2602_p4 = scmp.lt.s32.totalorder %s2871_s23, %s2600_s26 }
  0x58   : > { %p2597_p13 = pnand %p2595_p6, %p3185_p8  ;;  %p2603_p2 = scmp.lt.s32.totalorder %s2601_s29, %s2594_s6 }
  0x5a   : > { %p2598_p0 = pneg %p2597_p13  ;;  %p2604_p1 = por %p2603_p2, %p2602_p4 }
  0x5c   : > { %p2605_p7 = pnand %p2604_p1, %p2598_p0 }
  0x5e   : > { %2608 = shalt.err (!%p2605_p7)
}
  0x5f   : > { %p3186_p5 = scmp.ne.s32.totalorder %s3179_s27, 0  ;;  %s1975_s28 = sshll.u32 %s2787_s24, 6 }
  0x60   : > { %s2124_s11 = sshll.u32 %s2711_s18, 10  ;;  %s215_s12 = scalar_lea.vmem [#allocation9], %s1975_s28 }
  0x61   : > { %2334 = dma.hbm_to_vmem [thread:$0]  (!%p3186_p5), %s2869_s20, 128, %s2871_s23, %s2802_s7  }
  0x62   : > { %s2922_s30 = scalar_lea.hbm %s3167_s3, %s2124_s11  ;;  %s222_s13 = sshll.u32 %s215_s12, 4  ;;  %s2924_s13 = int_to_ptr.vmem [resolvable:$true] %s222_s13 }
  0x63   : > { %s212_s14 = scalar_lea.sflag [#allocation10], %s2787_s24  ;;  %s2609_s6 = scalar_lea.hbm %s2922_s30, 1024 }
  0x64   : > { %p2610_p12 = scmp.ne.s32.totalorder %s2922_s30, %s2609_s6  ;;  %s2614_s20 = scalar_lea.hbm %s3167_s3, 2048 }
  0x65   : > { %p2615_p11 = scmp.lt.u32.totalorder %s2922_s30, %s3167_s3  ;;  %p2616_p9 = scmp.lt.u32.totalorder %s2614_s20, %s2609_s6 }
  0x66   : > { %p2612_p3 = pnand %p2610_p12, %p3185_p8  ;;  %p2618_p13 = scmp.lt.u32.totalorder %s2609_s6, %s2922_s30 }
  0x67   : > { %p2617_p6 = por %p2616_p9, %p2615_p11 }
  0x68   : > { %p2613_p10 = pneg %p2612_p3 }
  0x69   : > { %p2619_p0 = por %p2618_p13, %p2617_p6 }
  0x6b   : > { %p2620_p4 = pnand %p2619_p0, %p2613_p10 }
  0x6d   : > { %2623 = shalt.err (!%p2620_p4)
}
  0x6e   : > { %s2624_s26 = scalar_lea.vmem %s2924_s13, 1024  ;;  %s2720_s29 = smov [#allocation9]  }
  0x6f   : > { %p2625_p2 = scmp.ne.s32.totalorder %s2924_s13, %s2624_s26  ;;  %s2629_s28 = sshll.u32 %s2720_s29, 4  ;;  %s2630_s28 = int_to_ptr.vmem [resolvable:$false] %s2629_s28 }
  0x70   : > { %s2631_s11 = scalar_lea.vmem %s2630_s28, 2048  ;;  %p2632_p12 = scmp.lt.s32.totalorder %s2924_s13, %s2630_s28 }
  0x71   : > { %p2627_p1 = pnand %p2625_p2, %p3185_p8  ;;  %p2633_p3 = scmp.lt.s32.totalorder %s2631_s11, %s2624_s26 }
  0x73   : > { %p2628_p7 = pneg %p2627_p1  ;;  %p2634_p11 = por %p2633_p3, %p2632_p12 }
  0x75   : > { %p2635_p9 = pnand %p2634_p11, %p2628_p7 }
  0x77   : > { %2638 = shalt.err (!%p2635_p9)
}
  0x78   : > { %s3187_s21 = smov 4   ;;  %s3188_s25 = smov 64  }
  0x79   : > { %2337 = dma.hbm_to_vmem [thread:$0]  (!%p3186_p5), %s2922_s30, 1024, %s2924_s13, %s212_s14, %s3188_s25, %s3188_s25, %s3187_s21  }
  0x7a   : > { %p3189_p8 = scmp.ne.s32.totalorder %s3182_s10, 0 }
  0x7b   : > { %p3190_p10 = scmp.eq.s32.totalorder (!%p3189_p8), %s2836_s5, 0 }
  0x7c   : > { %234 = sbr.rel (%p3189_p8) target bundleno = 819 (0x333), region = 36 }
  0x83   : > { %2682 = dma.done.wait (%p3190_p10), [#allocation4], 4096   ;;  %p3191_p6 = pmov %p3190_p10 }
  0x84   : > { %s240_s27 = sand.u32 1, %s2836_s5   ;;  %s242_s9 = sand.u32 1, %s2703_s16  }
  0x85   : > { %2684 = vsyncadd (%p3191_p6), [#allocation4], 4294963200  ;;  %s2309_s12 = smul.u32 1000, %s242_s9  ;;  %s241_s6 = scalar_lea.sflag [#allocation7], %s240_s27 }
  0x86   : > { %p3192_p13 = scmp.ne.s32.totalorder %s3181_s8, 0 }
  0x87   : > { %s2961_s24 = scalar_lea.vmem [#allocation6], %s2309_s12 }
  0x88   : > { %2686 = dma.done.wait (%p3192_p13), %s241_s6, 16128  }
  0x89   : > { %2688 = vsyncadd (%p3192_p13), %s241_s6, 4294951168  ;;  %s1980_s10 = sshll.u32 %s242_s9, 3  ;;  %s1981_s30 = sshll.u32 %s242_s9, 6 }
  0x8a   : > { %s2967_s13 = scalar_lea.vmem [#allocation8], %s1980_s10  ;;  %s259_s14 = scalar_lea.sflag [#allocation10], %s242_s9 }
  0x8b   : > { %s2969_s18 = scalar_lea.vmem [#allocation9], %s1981_s30 }
  0x8c   : > { %2690 = dma.done.wait (%p3192_p13), %s259_s14, 1024  }
  0x8d   : > { %2692 = vsyncadd (%p3192_p13), %s259_s14, 4294966272  ;;  %p3193_p5 = scmp.ne.s32.totalorder %s2836_s5, 0 }
  0x8e   : > { %v1983_v0 = vld [vmem:[%s2967_s13 + $0x3] ss:$0 sm:$0xff] (!%p3193_p5) }
  0x8f   : > { %297 = sbr.rel (%p3193_p5) target bundleno = 150 (0x96), region = 56  ;;  %303 = vst [vmem:[#allocation2] sm:$0xff] (!%p3193_p5), %v1983_v0  ;;  %304 = vst [vmem:[#allocation2 + $0x8] sm:$0xff] (!%p3193_p5), %v1983_v0 }
  0x96 PF: > { %v2386_v1 = vld [vmem:[%s2961_s24 + $0x40] sm:$0xff]   ;;  %v2390_v5 = vld [vmem:[%s2961_s24 + $0x48] sm:$0xff]   ;;  %v2394_v9 = vld [vmem:[%s2961_s24 + $0x50] sm:$0xff]   ;;  %vm1358_vm0 = vcmask 654336   ;;  %vm2723_vm1 = vmmov 0   ;;  %p2119_p0 = scmp.ne.s32.totalorder %s2836_s5, 1 }
  0x97   : > { %v2387_v2 = vld [vmem:[%s2961_s24 + $0xc0] sm:$0xff]   ;;  %2125 = vmatprep.subr.bf16.mxu0 %v2386_v1  ;;  %v2391_v6 = vld [vmem:[%s2961_s24 + $0xc8] sm:$0xff]   ;;  %v2395_v10 = vld [vmem:[%s2961_s24 + $0xd0] sm:$0xff]  }
  0x98   : > { %v2388_v3 = vld [vmem:[%s2961_s24] sm:$0xff]   ;;  %2147 = vmatprep.subr.bf16.mxu1 %v2387_v2  ;;  %v2392_v7 = vld [vmem:[%s2961_s24 + $0x8] sm:$0xff]   ;;  %v2396_v11 = vld [vmem:[%s2961_s24 + $0x10] sm:$0xff]  }
  0x99   : > { %v2389_v4 = vld [vmem:[%s2961_s24 + $0x80] sm:$0xff]   ;;  %2126 = vmatpush3.bf16.msra.mxu0 %v2388_v3  ;;  %v2393_v8 = vld [vmem:[%s2961_s24 + $0x88] sm:$0xff]   ;;  %v2397_v12 = vld [vmem:[%s2961_s24 + $0x90] sm:$0xff]  }
  0x9a   : > { %2148 = vmatpush3.bf16.msra.mxu1 %v2389_v4  ;;  %2127 = vmatprep.subr.bf16.mxu0 %v2390_v5  ;;  %v2398_v13 = vld [vmem:[%s2961_s24 + $0x58] sm:$0xff]   ;;  %v2402_v17 = vld [vmem:[%s2961_s24 + $0x60] sm:$0xff]   ;;  %v2406_v21 = vld [vmem:[%s2961_s24 + $0x68] sm:$0xff]  }
  0x9b   : > { %2149 = vmatprep.subr.bf16.mxu1 %v2391_v6  ;;  %v2399_v14 = vld [vmem:[%s2961_s24 + $0xd8] sm:$0xff]   ;;  %v2403_v18 = vld [vmem:[%s2961_s24 + $0xe0] sm:$0xff]   ;;  %v2407_v22 = vld [vmem:[%s2961_s24 + $0xe8] sm:$0xff]  }
  0x9c   : > { %v2400_v15 = vld [vmem:[%s2961_s24 + $0x18] sm:$0xff]   ;;  %v2404_v19 = vld [vmem:[%s2961_s24 + $0x20] sm:$0xff]   ;;  %v2408_v23 = vld [vmem:[%s2961_s24 + $0x28] sm:$0xff]  }
  0x9d   : > { %2128 = vmatpush3.bf16.msra.mxu0 %v2392_v7  ;;  %v2401_v16 = vld [vmem:[%s2961_s24 + $0x98] sm:$0xff]   ;;  %v2405_v20 = vld [vmem:[%s2961_s24 + $0xa0] sm:$0xff]   ;;  %v2409_v24 = vld [vmem:[%s2961_s24 + $0xa8] sm:$0xff]  }
  0x9e   : > { %2150 = vmatpush3.bf16.msra.mxu1 %v2393_v8  ;;  %2129 = vmatprep.subr.bf16.mxu0 %v2394_v9  ;;  %v2410_v25 = vld [vmem:[%s2961_s24 + $0x70] sm:$0xff]   ;;  %v2414_v29 = vld [vmem:[%s2961_s24 + $0x78] sm:$0xff]   ;;  %v306_v33 = vld [vmem:[#allocation3 + $0x8] sm:$0xff] }
  0x9f   : > { %2151 = vmatprep.subr.bf16.mxu1 %v2395_v10  ;;  %v2411_v26 = vld [vmem:[%s2961_s24 + $0xf0] sm:$0xff]   ;;  %v2415_v30 = vld [vmem:[%s2961_s24 + $0xf8] sm:$0xff]   ;;  %v322_v34 = vld [vmem:[#allocation3 + $0x88] sm:$0xff] }
  0xa0   : > { %v2412_v27 = vld [vmem:[%s2961_s24 + $0x30] sm:$0xff]   ;;  %v2416_v31 = vld [vmem:[%s2961_s24 + $0x38] sm:$0xff]   ;;  %v338_v36 = vpack.c.bf16 %v322_v34, %v306_v33  ;;  %v2418_v45 = vld [vmem:[%s2961_s24 + $0x140] sm:$0xff]  }
  0xa1   : > { %2130 = vmatpush3.bf16.msra.mxu0 %v2396_v11  ;;  %v2413_v28 = vld [vmem:[%s2961_s24 + $0xb0] sm:$0xff]   ;;  %v2417_v32 = vld [vmem:[%s2961_s24 + $0xb8] sm:$0xff]   ;;  %v2419_v46 = vld [vmem:[%s2961_s24 + $0x1c0] sm:$0xff]  }
  0xa2   : > { %2152 = vmatpush3.bf16.msra.mxu1 %v2397_v12  ;;  %2131 = vmatprep.subr.bf16.mxu0 %v2398_v13  ;;  %v308_v35 = vld [vmem:[#allocation3 + $0x18] sm:$0xff]  ;;  %v305_v38 = vld [vmem:[#allocation3] sm:$0xff]  ;;  %v307_v42 = vld [vmem:[#allocation3 + $0x10] sm:$0xff] }
  0xa3   : > { %2153 = vmatprep.subr.bf16.mxu1 %v2399_v14  ;;  %v324_v37 = vld [vmem:[#allocation3 + $0x98] sm:$0xff]  ;;  %v321_v39 = vld [vmem:[#allocation3 + $0x80] sm:$0xff]  ;;  %v323_v43 = vld [vmem:[#allocation3 + $0x90] sm:$0xff]  ;;  %1394 = vmatprep.mubr.bf16.mxu0 %v338_v36 }
  0xa4   : > { %v340_v40 = vpack.c.bf16 %v324_v37, %v308_v35  ;;  %v337_v41 = vpack.c.bf16 %v321_v39, %v305_v38  ;;  %v339_v44 = vpack.c.bf16 %v323_v43, %v307_v42  ;;  %v2420_v47 = vld [vmem:[%s2961_s24 + $0x100] sm:$0xff]   ;;  %v2422_v49 = vld [vmem:[%s2961_s24 + $0x148] sm:$0xff]   ;;  %v2426_v53 = vld [vmem:[%s2961_s24 + $0x150] sm:$0xff]  }
  0xa5   : > { %2132 = vmatpush3.bf16.msra.mxu0 %v2400_v15  ;;  %v2421_v48 = vld [vmem:[%s2961_s24 + $0x180] sm:$0xff]   ;;  %v2423_v50 = vld [vmem:[%s2961_s24 + $0x1c8] sm:$0xff]   ;;  %v2427_v54 = vld [vmem:[%s2961_s24 + $0x1d0] sm:$0xff]  }
  0xa6   : > { %2154 = vmatpush3.bf16.msra.mxu1 %v2401_v16  ;;  %2133 = vmatprep.subr.bf16.mxu0 %v2402_v17  ;;  %v2424_v51 = vld [vmem:[%s2961_s24 + $0x108] sm:$0xff]   ;;  %v2428_v55 = vld [vmem:[%s2961_s24 + $0x110] sm:$0xff]   ;;  %v2430_v57 = vld [vmem:[%s2961_s24 + $0x158] sm:$0xff]  }
  0xa7   : > { %2155 = vmatprep.subr.bf16.mxu1 %v2403_v18  ;;  %1435 = vmatprep.mubr.bf16.mxu1 %v340_v40  ;;  %v2425_v52 = vld [vmem:[%s2961_s24 + $0x188] sm:$0xff]   ;;  %v2429_v56 = vld [vmem:[%s2961_s24 + $0x190] sm:$0xff]   ;;  %v2431_v58 = vld [vmem:[%s2961_s24 + $0x1d8] sm:$0xff]  }
  0xa8   : > { %v2432_v59 = vld [vmem:[%s2961_s24 + $0x118] sm:$0xff]   ;;  %v2434_v61 = vld [vmem:[%s2961_s24 + $0x160] sm:$0xff]   ;;  %v2438_v1 = vld [vmem:[%s2961_s24 + $0x168] sm:$0xff]  }
  0xa9   : > { %2134 = vmatpush3.bf16.msra.mxu0 %v2404_v19  ;;  %v2433_v60 = vld [vmem:[%s2961_s24 + $0x198] sm:$0xff]   ;;  %v2435_v62 = vld [vmem:[%s2961_s24 + $0x1e0] sm:$0xff]   ;;  %v2439_v2 = vld [vmem:[%s2961_s24 + $0x1e8] sm:$0xff]  }
  0xaa   : > { %2156 = vmatpush3.bf16.msra.mxu1 %v2405_v20  ;;  %2135 = vmatprep.subr.bf16.mxu0 %v2406_v21  ;;  %v2436_v63 = vld [vmem:[%s2961_s24 + $0x120] sm:$0xff]   ;;  %v2440_v3 = vld [vmem:[%s2961_s24 + $0x128] sm:$0xff]   ;;  %v2442_v5 = vld [vmem:[%s2961_s24 + $0x170] sm:$0xff]  }
  0xab   : > { %2157 = vmatprep.subr.bf16.mxu1 %v2407_v22  ;;  %v2437_v0 = vld [vmem:[%s2961_s24 + $0x1a0] sm:$0xff]   ;;  %v2441_v4 = vld [vmem:[%s2961_s24 + $0x1a8] sm:$0xff]   ;;  %v2443_v6 = vld [vmem:[%s2961_s24 + $0x1f0] sm:$0xff]  }
  0xac   : > { %v2444_v7 = vld [vmem:[%s2961_s24 + $0x130] sm:$0xff]   ;;  %v2446_v9 = vld [vmem:[%s2961_s24 + $0x178] sm:$0xff]   ;;  %v310_v13 = vld [vmem:[#allocation3 + $0x28] sm:$0xff] }
  0xad   : > { %2136 = vmatpush3.bf16.msra.mxu0 %v2408_v23  ;;  %v2445_v8 = vld [vmem:[%s2961_s24 + $0x1b0] sm:$0xff]   ;;  %v2447_v10 = vld [vmem:[%s2961_s24 + $0x1f8] sm:$0xff]   ;;  %v326_v14 = vld [vmem:[#allocation3 + $0xa8] sm:$0xff] }
  0xae   : > { %2158 = vmatpush3.bf16.msra.mxu1 %v2409_v24  ;;  %2137 = vmatprep.subr.bf16.mxu0 %v2410_v25  ;;  %v2448_v11 = vld [vmem:[%s2961_s24 + $0x138] sm:$0xff]   ;;  %v342_v17 = vpack.c.bf16 %v326_v14, %v310_v13  ;;  %v311_v21 = vld [vmem:[#allocation3 + $0x30] sm:$0xff]  ;;  %v2450_v25 = vld [vmem:[%s2961_s24 + $0x240] sm:$0xff]  }
  0xaf   : > { %2159 = vmatprep.subr.bf16.mxu1 %v2411_v26  ;;  %v2449_v12 = vld [vmem:[%s2961_s24 + $0x1b8] sm:$0xff]   ;;  %v327_v23 = vld [vmem:[#allocation3 + $0xb0] sm:$0xff]  ;;  %v2451_v26 = vld [vmem:[%s2961_s24 + $0x2c0] sm:$0xff]  }
  0xb0   : > { %v312_v15 = vld [vmem:[#allocation3 + $0x38] sm:$0xff]  ;;  %v309_v19 = vld [vmem:[#allocation3 + $0x20] sm:$0xff]  ;;  %v343_v24 = vpack.c.bf16 %v327_v23, %v311_v21  ;;  %v2497_v21 = vld [vmem:[%s2961_s24 + $0x368] sm:$0xff]  }
  0xb1   : > { %2138 = vmatpush3.bf16.msra.mxu0 %v2412_v27  ;;  %v328_v16 = vld [vmem:[#allocation3 + $0xb8] sm:$0xff]  ;;  %v325_v20 = vld [vmem:[#allocation3 + $0xa0] sm:$0xff]  ;;  %v2499_v23 = vld [vmem:[%s2961_s24 + $0x3a8] sm:$0xff]  }
  0xb2   : > { %2160 = vmatpush3.bf16.msra.mxu1 %v2413_v28  ;;  %2139 = vmatprep.subr.bf16.mxu0 %v2414_v29  ;;  %v344_v18 = vpack.c.bf16 %v328_v16, %v312_v15  ;;  %v341_v22 = vpack.c.bf16 %v325_v20, %v309_v19  ;;  %v2452_v27 = vld [vmem:[%s2961_s24 + $0x200] sm:$0xff]   ;;  %v2454_v29 = vld [vmem:[%s2961_s24 + $0x248] sm:$0xff]   ;;  %v2458_v33 = vld [vmem:[%s2961_s24 + $0x250] sm:$0xff]  }
  0xb3   : > { %2161 = vmatprep.subr.bf16.mxu1 %v2415_v30  ;;  %v2453_v28 = vld [vmem:[%s2961_s24 + $0x280] sm:$0xff]   ;;  %v2455_v30 = vld [vmem:[%s2961_s24 + $0x2c8] sm:$0xff]   ;;  %v2459_v34 = vld [vmem:[%s2961_s24 + $0x2d0] sm:$0xff]  }
  0xb4   : > { %v2460_v35 = vld [vmem:[%s2961_s24 + $0x210] sm:$0xff]   ;;  %v2462_v37 = vld [vmem:[%s2961_s24 + $0x258] sm:$0xff]   ;;  %v2467_v42 = vld [vmem:[%s2961_s24 + $0x2e0] sm:$0xff]  }
  0xb5   : > { %2140 = vmatpush3.bf16.msra.mxu0 %v2416_v31  ;;  %v2456_v31 = vld [vmem:[%s2961_s24 + $0x208] sm:$0xff]   ;;  %v2461_v36 = vld [vmem:[%s2961_s24 + $0x290] sm:$0xff]   ;;  %v2463_v38 = vld [vmem:[%s2961_s24 + $0x2d8] sm:$0xff]  }
  0xb6   : > { %2162 = vmatpush3.bf16.msra.mxu1 %v2417_v32  ;;  %2169 = vmatprep.subr.bf16.mxu0 %v2418_v45  ;;  %v2457_v32 = vld [vmem:[%s2961_s24 + $0x288] sm:$0xff]   ;;  %v2464_v39 = vld [vmem:[%s2961_s24 + $0x218] sm:$0xff]   ;;  %v2468_v43 = vld [vmem:[%s2961_s24 + $0x220] sm:$0xff]  }
  0xb7   : > { %2191 = vmatprep.subr.bf16.mxu1 %v2419_v46  ;;  %v2465_v40 = vld [vmem:[%s2961_s24 + $0x298] sm:$0xff]   ;;  %v2470_v45 = vld [vmem:[%s2961_s24 + $0x268] sm:$0xff]   ;;  %v2489_v13 = vld [vmem:[%s2961_s24 + $0x310] sm:$0xff]  }
  0xb8   : > { %1395 = vmatmul.mubr.bf16.vlgmr.msra.gmra.mrb[0].mxu0 %v337_v41  ;;  %v2466_v41 = vld [vmem:[%s2961_s24 + $0x260] sm:$0xff]   ;;  %v2471_v46 = vld [vmem:[%s2961_s24 + $0x2e8] sm:$0xff]   ;;  %v2490_v14 = vld [vmem:[%s2961_s24 + $0x390] sm:$0xff]  }
  0xb9   : > { %1436 = vmatmul.mubr.bf16.vlgmr.msra.gmra.mrb[0].mxu1 %v339_v44  ;;  %2170 = vmatpush3.bf16.msra.mxu0 %v2420_v47  ;;  %v2469_v44 = vld [vmem:[%s2961_s24 + $0x2a0] sm:$0xff]   ;;  %v2472_v47 = vld [vmem:[%s2961_s24 + $0x228] sm:$0xff]   ;;  %v2491_v15 = vld [vmem:[%s2961_s24 + $0x358] sm:$0xff]  }
  0xba   : > { %2192 = vmatpush3.bf16.msra.mxu1 %v2421_v48  ;;  %2171 = vmatprep.subr.bf16.mxu0 %v2422_v49  ;;  %v2473_v48 = vld [vmem:[%s2961_s24 + $0x2a8] sm:$0xff]   ;;  %v2474_v49 = vld [vmem:[%s2961_s24 + $0x270] sm:$0xff]   ;;  %v2492_v16 = vld [vmem:[%s2961_s24 + $0x318] sm:$0xff]  }
  0xbb   : > { %2193 = vmatprep.subr.bf16.mxu1 %v2423_v50  ;;  %1476 = vmatprep.mubr.bf16.mxu0 %v342_v17  ;;  %v2475_v50 = vld [vmem:[%s2961_s24 + $0x2f0] sm:$0xff]   ;;  %v2493_v17 = vld [vmem:[%s2961_s24 + $0x398] sm:$0xff]   ;;  %v2495_v19 = vld [vmem:[%s2961_s24 + $0x320] sm:$0xff]  }
  0xbc   : > { %1517 = vmatprep.mubr.bf16.mxu1 %v344_v18  ;;  %v2494_v18 = vld [vmem:[%s2961_s24 + $0x360] sm:$0xff]  }
  0xbd   : > { %2172 = vmatpush3.bf16.msra.mxu0 %v2424_v51  ;;  %v2476_v51 = vld [vmem:[%s2961_s24 + $0x230] sm:$0xff]   ;;  %v2496_v20 = vld [vmem:[%s2961_s24 + $0x3a0] sm:$0xff]  }
  0xbe   : > { %2194 = vmatpush3.bf16.msra.mxu1 %v2425_v52  ;;  %2173 = vmatprep.subr.bf16.mxu0 %v2426_v53  ;;  %v2477_v52 = vld [vmem:[%s2961_s24 + $0x2b0] sm:$0xff]   ;;  %v2478_v53 = vld [vmem:[%s2961_s24 + $0x278] sm:$0xff]  }
  0xbf   : > { %2195 = vmatprep.subr.bf16.mxu1 %v2427_v54  ;;  %v2479_v54 = vld [vmem:[%s2961_s24 + $0x2f8] sm:$0xff]  }
  0xc1   : > { %2174 = vmatpush3.bf16.msra.mxu0 %v2428_v55  ;;  %v2480_v55 = vld [vmem:[%s2961_s24 + $0x238] sm:$0xff]  }
  0xc2   : > { %2196 = vmatpush3.bf16.msra.mxu1 %v2429_v56  ;;  %2175 = vmatprep.subr.bf16.mxu0 %v2430_v57  ;;  %v2481_v56 = vld [vmem:[%s2961_s24 + $0x2b8] sm:$0xff]   ;;  %v314_v57 = vld [vmem:[#allocation3 + $0x48] sm:$0xff] }
  0xc3   : > { %2197 = vmatprep.subr.bf16.mxu1 %v2431_v58  ;;  %v330_v58 = vld [vmem:[#allocation3 + $0xc8] sm:$0xff] }
  0xc5   : > { %2176 = vmatpush3.bf16.msra.mxu0 %v2432_v59  ;;  %v346_v59 = vpack.c.bf16 %v330_v58, %v314_v57 }
  0xc6   : > { %2198 = vmatpush3.bf16.msra.mxu1 %v2433_v60  ;;  %2177 = vmatprep.subr.bf16.mxu0 %v2434_v61  ;;  %v316_v60 = vld [vmem:[#allocation3 + $0x58] sm:$0xff] }
  0xc7   : > { %2199 = vmatprep.subr.bf16.mxu1 %v2435_v62  ;;  %v332_v61 = vld [vmem:[#allocation3 + $0xd8] sm:$0xff]  ;;  %v313_v62 = vld [vmem:[#allocation3 + $0x40] sm:$0xff] }
  0xc9   : > { %2178 = vmatpush3.bf16.msra.mxu0 %v2436_v63  ;;  %v348_v63 = vpack.c.bf16 %v332_v61, %v316_v60 }
  0xca   : > { %2200 = vmatpush3.bf16.msra.mxu1 %v2437_v0  ;;  %2179 = vmatprep.subr.bf16.mxu0 %v2438_v1  ;;  %v329_v0 = vld [vmem:[#allocation3 + $0xc0] sm:$0xff]  ;;  %v315_v1 = vld [vmem:[#allocation3 + $0x50] sm:$0xff] }
  0xcb   : > { %2201 = vmatprep.subr.bf16.mxu1 %v2439_v2  ;;  %v331_v2 = vld [vmem:[#allocation3 + $0xd0] sm:$0xff] }
  0xcd   : > { %2180 = vmatpush3.bf16.msra.mxu0 %v2440_v3  ;;  %v345_v3 = vpack.c.bf16 %v329_v0, %v313_v62  ;;  %v2511_v0 = vld [vmem:[%s2969_s18] sm:$0xff]  }
  0xce   : > { %2202 = vmatpush3.bf16.msra.mxu1 %v2441_v4  ;;  %2181 = vmatprep.subr.bf16.mxu0 %v2442_v5  ;;  %v347_v4 = vpack.c.bf16 %v331_v2, %v315_v1  ;;  %v2482_v5 = vld [vmem:[%s2961_s24 + $0x340] sm:$0xff]   ;;  %v2722_v1 = vmov 0.0  }
  0xcf   : > { %2203 = vmatprep.subr.bf16.mxu1 %v2443_v6  ;;  %v2721_v6 = vmov 0   ;;  %v2512_v2 = vld [vmem:[%s2969_s18 + $0x8] sm:$0xff]  }
  0xd1   : > { %2182 = vmatpush3.bf16.msra.mxu0 %v2444_v7  ;;  %v2483_v7 = vld [vmem:[%s2961_s24 + $0x300] sm:$0xff]  }
  0xd2   : > { %2204 = vmatpush3.bf16.msra.mxu1 %v2445_v8  ;;  %2183 = vmatprep.subr.bf16.mxu0 %v2446_v9  ;;  %v2484_v8 = vld [vmem:[%s2961_s24 + $0x380] sm:$0xff]   ;;  %v2485_v9 = vld [vmem:[%s2961_s24 + $0x348] sm:$0xff]  }
  0xd3   : > { %2205 = vmatprep.subr.bf16.mxu1 %v2447_v10  ;;  %v2486_v10 = vld [vmem:[%s2961_s24 + $0x308] sm:$0xff]  }
  0xd5   : > { %2184 = vmatpush3.bf16.msra.mxu0 %v2448_v11  ;;  %v2487_v11 = vld [vmem:[%s2961_s24 + $0x388] sm:$0xff]  }
  0xd6   : > { %2206 = vmatpush3.bf16.msra.mxu1 %v2449_v12  ;;  %2213 = vmatprep.subr.bf16.mxu0 %v2450_v25  ;;  %v2488_v12 = vld [vmem:[%s2961_s24 + $0x350] sm:$0xff]  }
  0xd7   : > { %2235 = vmatprep.subr.bf16.mxu1 %v2451_v26  ;;  %v2501_v25 = vld [vmem:[%s2961_s24 + $0x330] sm:$0xff]  }
  0xd8   : > { %1477 = vmatmul.mubr.bf16.vlgmr.msra.gmra.mrb[4].mxu0 %v341_v22  ;;  %v2498_v22 = vld [vmem:[%s2961_s24 + $0x328] sm:$0xff]   ;;  %v2502_v26 = vld [vmem:[%s2961_s24 + $0x3b0] sm:$0xff]  }
  0xd9   : > { %1518 = vmatmul.mubr.bf16.vlgmr.msra.gmra.mrb[4].mxu1 %v343_v24  ;;  %2214 = vmatpush3.bf16.msra.mxu0 %v2452_v27  ;;  %v2500_v24 = vld [vmem:[%s2961_s24 + $0x370] sm:$0xff]   ;;  %v318_v27 = vld [vmem:[#allocation3 + $0x68] sm:$0xff] }
  0xda   : > { %2236 = vmatpush3.bf16.msra.mxu1 %v2453_v28  ;;  %2215 = vmatprep.subr.bf16.mxu0 %v2454_v29  ;;  %v334_v28 = vld [vmem:[#allocation3 + $0xe8] sm:$0xff]  ;;  %v2503_v29 = vld [vmem:[%s2961_s24 + $0x378] sm:$0xff]  }
  0xdb   : > { %2237 = vmatprep.subr.bf16.mxu1 %v2455_v30  ;;  %1558 = vmatprep.mubr.bf16.mxu0 %v346_v59  ;;  %v350_v30 = vpack.c.bf16 %v334_v28, %v318_v27 }
  0xdc   : > { %1599 = vmatprep.mubr.bf16.mxu1 %v348_v63 }
  0xdd   : > { %2216 = vmatpush3.bf16.msra.mxu0 %v2456_v31  ;;  %v2504_v31 = vld [vmem:[%s2961_s24 + $0x338] sm:$0xff]  }
  0xde   : > { %2238 = vmatpush3.bf16.msra.mxu1 %v2457_v32  ;;  %2217 = vmatprep.subr.bf16.mxu0 %v2458_v33  ;;  %v2505_v32 = vld [vmem:[%s2961_s24 + $0x3b8] sm:$0xff]  }
  0xdf   : > { %2239 = vmatprep.subr.bf16.mxu1 %v2459_v34  ;;  %v317_v33 = vld [vmem:[#allocation3 + $0x60] sm:$0xff] }
  0xe0   : > { %v333_v34 = vld [vmem:[#allocation3 + $0xe0] sm:$0xff] }
  0xe1   : > { %2218 = vmatpush3.bf16.msra.mxu0 %v2460_v35  ;;  %v320_v35 = vld [vmem:[#allocation3 + $0x78] sm:$0xff] }
  0xe2   : > { %2240 = vmatpush3.bf16.msra.mxu1 %v2461_v36  ;;  %2219 = vmatprep.subr.bf16.mxu0 %v2462_v37  ;;  %v336_v36 = vld [vmem:[#allocation3 + $0xf8] sm:$0xff]  ;;  %v349_v37 = vpack.c.bf16 %v333_v34, %v317_v33 }
  0xe3   : > { %2241 = vmatprep.subr.bf16.mxu1 %v2463_v38  ;;  %v2506_v38 = vld [vmem:[%s2961_s24 + $0x3c0] sm:$0xff]  }
  0xe5   : > { %2220 = vmatpush3.bf16.msra.mxu0 %v2464_v39  ;;  %v352_v39 = vpack.c.bf16 %v336_v36, %v320_v35 }
  0xe6   : > { %2242 = vmatpush3.bf16.msra.mxu1 %v2465_v40  ;;  %2221 = vmatprep.subr.bf16.mxu0 %v2466_v41  ;;  %v2507_v40 = vld [vmem:[%s2961_s24 + $0x3c8] sm:$0xff]   ;;  %v2508_v41 = vld [vmem:[%s2961_s24 + $0x3d0] sm:$0xff]  }
  0xe7   : > { %2243 = vmatprep.subr.bf16.mxu1 %v2467_v42  ;;  %v2509_v42 = vld [vmem:[%s2961_s24 + $0x3d8] sm:$0xff]  }
  0xe9   : > { %2222 = vmatpush3.bf16.msra.mxu0 %v2468_v43  ;;  %v2510_v43 = vld [vmem:[%s2961_s24 + $0x3e0] sm:$0xff]  }
  0xea   : > { %2244 = vmatpush3.bf16.msra.mxu1 %v2469_v44  ;;  %2223 = vmatprep.subr.bf16.mxu0 %v2470_v45  ;;  %v319_v44 = vld [vmem:[#allocation3 + $0x70] sm:$0xff] }
  0xeb   : > { %2245 = vmatprep.subr.bf16.mxu1 %v2471_v46  ;;  %v335_v45 = vld [vmem:[#allocation3 + $0xf0] sm:$0xff] }
  0xec   : > { %v351_v46 = vpack.c.bf16 %v335_v45, %v319_v44 }
  0xed   : > { %2224 = vmatpush3.bf16.msra.mxu0 %v2472_v47 }
  0xee   : > { %2246 = vmatpush3.bf16.msra.mxu1 %v2473_v48  ;;  %2225 = vmatprep.subr.bf16.mxu0 %v2474_v49  ;;  %v1984_v49 = vld [vmem:[%s2967_s13] ss:$0 sm:$0xff] }
  0xef   : > { %2247 = vmatprep.subr.bf16.mxu1 %v2475_v50 }
  0xf1   : > { %2226 = vmatpush3.bf16.msra.mxu0 %v2476_v51 }
  0xf2   : > { %2248 = vmatpush3.bf16.msra.mxu1 %v2477_v52  ;;  %2227 = vmatprep.subr.bf16.mxu0 %v2478_v53 }
  0xf3   : > { %2249 = vmatprep.subr.bf16.mxu1 %v2479_v54 }
  0xf5   : > { %2228 = vmatpush3.bf16.msra.mxu0 %v2480_v55 }
  0xf6   : > { %2250 = vmatpush3.bf16.msra.mxu1 %v2481_v56  ;;  %2257 = vmatprep.subr.bf16.mxu0 %v2482_v5  ;;  %v2515_v5 = vld [vmem:[%s2969_s18 + $0x20] sm:$0xff]  }
  0xf7   : > { %1649 = vmatprep.subr.bf16.mxu1 %v2721_v6 }
  0xf8   : > { %1559 = vmatmul.mubr.bf16.vlgmr.msra.gmra.mrb[8].mxu0 %v345_v3  ;;  %v2513_v3 = vld [vmem:[%s2969_s18 + $0x10] sm:$0xff]  }
  0xf9   : > { %1600 = vmatmul.mubr.bf16.vlgmr.msra.gmra.mrb[8].mxu1 %v347_v4  ;;  %2258 = vmatpush3.bf16.msra.mxu0 %v2483_v7  ;;  %v2514_v4 = vld [vmem:[%s2969_s18 + $0x18] sm:$0xff]  }
  0xfa   : > { %1650 = vmatpush1.bf16.msra.mxu1 %v2484_v8  ;;  %2259 = vmatprep.subr.bf16.mxu0 %v2485_v9  ;;  %v2516_v9 = vld [vmem:[%s2969_s18 + $0x28] sm:$0xff]  }
  0xfb   : > { %1651 = vmatprep.subr.bf16.mxu1 %v2721_v6  ;;  %1640 = vmatprep.mubr.bf16.mxu0 %v350_v30 }
  0xfc   : > { %2110 = vmatprep.mubr.msk.bf16.mxu1 %vm1358_vm0, %v352_v39 }
  0xfd   : > { %2260 = vmatpush3.bf16.msra.mxu0 %v2486_v10 }
  0xfe   : > { %1652 = vmatpush1.bf16.msra.mxu1 %v2487_v11  ;;  %2261 = vmatprep.subr.bf16.mxu0 %v2488_v12 }
  0xff   : > { %1653 = vmatprep.subr.bf16.mxu1 %v2721_v6 }
 0x101   : > { %2262 = vmatpush3.bf16.msra.mxu0 %v2489_v13 }
 0x102   : > { %1654 = vmatpush1.bf16.msra.mxu1 %v2490_v14  ;;  %2263 = vmatprep.subr.bf16.mxu0 %v2491_v15 }
 0x103   : > { %1655 = vmatprep.subr.bf16.mxu1 %v2721_v6 }
 0x105   : > { %2264 = vmatpush3.bf16.msra.mxu0 %v2492_v16 }
 0x106   : > { %1656 = vmatpush1.bf16.msra.mxu1 %v2493_v17  ;;  %2265 = vmatprep.subr.bf16.mxu0 %v2494_v18 }
 0x107   : > { %1657 = vmatprep.subr.bf16.mxu1 %v2721_v6 }
 0x109   : > { %2266 = vmatpush3.bf16.msra.mxu0 %v2495_v19 }
 0x10a   : > { %1658 = vmatpush1.bf16.msra.mxu1 %v2496_v20  ;;  %2267 = vmatprep.subr.bf16.mxu0 %v2497_v21  ;;  %v2517_v20 = vld [vmem:[%s2969_s18 + $0x30] sm:$0xff]  }
 0x10b   : > { %1659 = vmatprep.subr.bf16.mxu1 %v2721_v6 }
 0x10d   : > { %2268 = vmatpush3.bf16.msra.mxu0 %v2498_v22 }
 0x10e   : > { %1660 = vmatpush1.bf16.msra.mxu1 %v2499_v23  ;;  %2269 = vmatprep.subr.bf16.mxu0 %v2500_v24  ;;  %v2518_v24 = vld [vmem:[%s2969_s18 + $0x38] sm:$0xff]  }
 0x10f   : > { %1661 = vmatprep.subr.bf16.mxu1 %v2721_v6 }
 0x111   : > { %2270 = vmatpush3.bf16.msra.mxu0 %v2501_v25 }
 0x112   : > { %1662 = vmatpush1.bf16.msra.mxu1 %v2502_v26  ;;  %2271 = vmatprep.subr.bf16.mxu0 %v2503_v29 }
 0x113   : > { %1663 = vmatprep.subr.bf16.mxu1 %v2721_v6 }
 0x115   : > { %2272 = vmatpush3.bf16.msra.mxu0 %v2504_v31 }
 0x116   : > { %1664 = vmatpush1.bf16.msra.mxu1 %v2505_v32  ;;  %2288 = vmatprep.subr.bf16.mxu0 %v2722_v1 }
 0x117   : > { %1665 = vmatprep.subr.bf16.mxu1 %v2721_v6 }
 0x118   : > { %1641 = vmatmul.mubr.bf16.vlgmr.msra.gmra.mrb[12].mxu0 %v349_v37 }
 0x119   : > { %2289 = vmatpush3.bf16.msra.mxu0 %v2511_v0  ;;  %2304 = vmatprep.mubr.msk.bf16.mxu0 %vm2723_vm1, %v2722_v1 }
 0x11a   : > { %1666 = vmatpush1.bf16.msra.mxu1 %v2506_v38  ;;  %2290 = vmatprep.subr.bf16.mxu0 %v2722_v1 }
 0x11b   : > { %1667 = vmatprep.subr.bf16.mxu1 %v2721_v6 }
 0x11d   : > { %2291 = vmatpush3.bf16.msra.mxu0 %v2512_v2 }
 0x11e   : > { %1668 = vmatpush1.bf16.msra.mxu1 %v2507_v40  ;;  %2292 = vmatprep.subr.bf16.mxu0 %v2722_v1 }
 0x11f   : > { %1669 = vmatprep.subr.bf16.mxu1 %v2721_v6 }
 0x121   : > { %2293 = vmatpush3.bf16.msra.mxu0 %v2513_v3 }
 0x122   : > { %1670 = vmatpush1.bf16.msra.mxu1 %v2508_v41  ;;  %2294 = vmatprep.subr.bf16.mxu0 %v2722_v1 }
 0x123   : > { %1671 = vmatprep.subr.bf16.mxu1 %v2721_v6 }
 0x125   : > { %2295 = vmatpush3.bf16.msra.mxu0 %v2514_v4 }
 0x126   : > { %1672 = vmatpush1.bf16.msra.mxu1 %v2509_v42  ;;  %2296 = vmatprep.subr.bf16.mxu0 %v2722_v1 }
 0x127   : > { %1673 = vmatprep.subr.bf16.mxu1 %v2721_v6 }
 0x129   : > { %2297 = vmatpush3.bf16.msra.mxu0 %v2515_v5 }
 0x12a   : > { %1674 = vmatpush1.bf16.msra.mxu1 %v2510_v43  ;;  %2298 = vmatprep.subr.bf16.mxu0 %v2722_v1 }
 0x12d   : > { %1682 = vmatmul.mubr.bf16.vlgmr.msra.gmra.mrb[12].mxu1 %v351_v46  ;;  %2299 = vmatpush3.bf16.msra.mxu0 %v2516_v9 }
 0x12e   : > { %2300 = vmatprep.subr.bf16.mxu0 %v2722_v1 }
 0x131   : > { %2301 = vmatpush3.bf16.msra.mxu0 %v2517_v20 }
 0x132   : > { %2302 = vmatprep.subr.bf16.mxu0 %v2722_v1 }
 0x135   : > { %2303 = vmatpush3.bf16.msra.mxu0 %v2518_v24 }
 0x18b   : > { %v2141_v47 = vpop.f32.mrb[0].mxu0 }
 0x18c   : > { %v2163_v48 = vpop.f32.mrb[0].mxu1  ;;  %v2142_v50 = vpop.f32.mrb[1].mxu0 }
 0x18d   : > { %v2143_v51 = vadd.f32 %v2142_v50, %v2141_v47  ;;  %v2164_v52 = vpop.f32.mrb[1].mxu1  ;;  %v2144_v53 = vpop.f32.mrb[2].mxu0 }
 0x18e   : > { %v2165_v54 = vadd.f32 %v2164_v52, %v2163_v48  ;;  %v2166_v55 = vpop.f32.mrb[2].mxu1  ;;  %v2145_v56 = vpop.f32.mrb[3].mxu0 }
 0x18f   : > { %v1397_v57 = vadd.f32 %v2143_v51, %v1984_v49  ;;  %v2146_v58 = vadd.f32 %v2145_v56, %v2144_v53  ;;  %v2167_v59 = vpop.f32.mrb[3].mxu1 }
 0x190   : > { %v2168_v60 = vadd.f32 %v2167_v59, %v2166_v55 }
 0x191   : > { %v1438_v61 = vadd.f32 %v2165_v54, %v1397_v57  ;;  %v1400_v62 = vadd.f32 %v2146_v58, %v1984_v49 }
 0x193   : > { %v1441_v63 = vadd.f32 %v2168_v60, %v1400_v62 }
 0x1ab   : > { %v2185_v6 = vpop.f32.mrb[4].mxu0 }
 0x1ac   : > { %v2207_v7 = vpop.f32.mrb[4].mxu1  ;;  %v2186_v8 = vpop.f32.mrb[5].mxu0 }
 0x1ad   : > { %v2187_v10 = vadd.f32 %v2186_v8, %v2185_v6  ;;  %v2208_v11 = vpop.f32.mrb[5].mxu1  ;;  %v2188_v12 = vpop.f32.mrb[6].mxu0 }
 0x1ae   : > { %v2209_v13 = vadd.f32 %v2208_v11, %v2207_v7  ;;  %v2210_v14 = vpop.f32.mrb[6].mxu1  ;;  %v2189_v15 = vpop.f32.mrb[7].mxu0 }
 0x1af   : > { %v1479_v16 = vadd.f32 %v2187_v10, %v1438_v61  ;;  %v2190_v17 = vadd.f32 %v2189_v15, %v2188_v12  ;;  %v2211_v18 = vpop.f32.mrb[7].mxu1  ;;  %v1720_v15 = vlaneseq }
 0x1b0   : > { %v2212_v19 = vadd.f32 %v2211_v18, %v2210_v14 }
 0x1b1   : > { %v1520_v21 = vadd.f32 %v2209_v13, %v1479_v16  ;;  %v1482_v22 = vadd.f32 %v2190_v17, %v1441_v63  ;;  %v1721_v16 = vshrl.u32 %v1720_v15, 7  ;;  %v1713_v17 = vld [vmem:[%s2967_s13 + $0x1] sm:$0x1] }
 0x1b3   : > { %v1523_v23 = vadd.f32 %v2212_v19, %v1482_v22  ;;  %v1722_v18 = vsub.s32 0, %v1721_v16 }
 0x1cb   : > { %v2229_v25 = vpop.f32.mrb[8].mxu0 }
 0x1cc   : > { %v2251_v26 = vpop.f32.mrb[8].mxu1  ;;  %v2230_v27 = vpop.f32.mrb[9].mxu0 }
 0x1cd   : > { %v2252_v28 = vpop.f32.mrb[9].mxu1  ;;  %v2231_v29 = vadd.f32 %v2230_v27, %v2229_v25  ;;  %v2232_v31 = vpop.f32.mrb[10].mxu0 }
 0x1ce   : > { %v2253_v30 = vadd.f32 %v2252_v28, %v2251_v26  ;;  %v2254_v32 = vpop.f32.mrb[10].mxu1  ;;  %v2233_v33 = vpop.f32.mrb[11].mxu0 }
 0x1cf   : > { %v2255_v34 = vpop.f32.mrb[11].mxu1  ;;  %v1561_v35 = vadd.f32 %v2231_v29, %v1520_v21  ;;  %v2234_v36 = vadd.f32 %v2233_v33, %v2232_v31  ;;  %v1717_v21 = vld [vmem:[%s2967_s13 + $0x2] sm:$0x1] }
 0x1d0   : > { %v2256_v37 = vadd.f32 %v2255_v34, %v2254_v32  ;;  %v1732_v31 = vld [vmem:[#allocation2] sm:$0xff]  ;;  %v1733_v33 = vld [vmem:[#allocation2 + $0x8] sm:$0xff] }
 0x1d1   : > { %v1602_v38 = vadd.f32 %v2253_v30, %v1561_v35  ;;  %v1564_v39 = vadd.f32 %v2234_v36, %v1523_v23 }
 0x1d3   : > { %v1605_v40 = vadd.f32 %v2256_v37, %v1564_v39 }
 0x1eb   : > { %v2273_v41 = vpop.f32.mrb[12].mxu0 }
 0x1ec   : > { %v2274_v42 = vpop.f32.mrb[13].mxu0 }
 0x1ed   : > { %v2275_v43 = vadd.f32 %v2274_v42, %v2273_v41  ;;  %v2276_v44 = vpop.f32.mrb[14].mxu0 }
 0x1ee   : > { %v2277_v45 = vpop.f32.mrb[15].mxu0 }
 0x1ef   : > { %v2278_v46 = vadd.f32 %v2277_v45, %v2276_v44  ;;  %v1643_v47 = vadd.f32 %v2275_v43, %v1602_v38 }
 0x1f1   : > { %v1646_v48 = vadd.f32 %v2278_v46, %v1605_v40 }
 0x200   : > { %v1683_v49 = vpop.f32.mrb[12].mxu1 }
 0x201   : > { %v1684_v50 = vadd.f32 %v1683_v49, %v1643_v47  ;;  %v1685_v51 = vpop.f32.mrb[13].mxu1 }
 0x202   : > { %v1686_v52 = vpop.f32.mrb[14].mxu1 }
 0x203   : > { %v1690_v53 = vmax.f32 %v1684_v50, 0.0  ;;  %v1687_v54 = vadd.f32 %v1686_v52, %v1646_v48  ;;  %v1688_v55 = vpop.f32.mrb[15].mxu1 }
 0x205   : > { %v1691_v56 = vmax.f32 %v1687_v54, 0.0  ;;  %v1699_v57 = vmul.f32 %v1690_v53, %v1690_v53 }
 0x207   : > { %v1692_v58 = vadd.f32 %v1691_v56, %v1690_v53  ;;  %v1700_v59 = vmul.f32 %v1691_v56, %v1691_v56 }
 0x209   : > { %v1693_v60 = vrot.slane %v1692_v58, 4  ;;  %v1701_v61 = vadd.f32 %v1700_v59, %v1699_v57 }
 0x20b   : > { %v1694_v62 = vadd.f32 %v1693_v60, %v1692_v58  ;;  %v1702_v63 = vrot.slane %v1701_v61, 4 }
 0x20d   : > { %v1695_v0 = vrot.slane %v1694_v62, 2  ;;  %v1703_v1 = vadd.f32 %v1702_v63, %v1701_v61 }
 0x20f   : > { %v1696_v2 = vadd.f32 %v1695_v0, %v1694_v62  ;;  %v1704_v3 = vrot.slane %v1703_v1, 2 }
 0x211   : > { %v1697_v4 = vrot.slane %v1696_v2, 1  ;;  %v1705_v5 = vadd.f32 %v1704_v3, %v1703_v1 }
 0x213   : > { %v1698_v6 = vadd.f32 %v1697_v4, %v1696_v2  ;;  %v1706_v7 = vrot.slane %v1705_v5, 1 }
 0x215   : > { %v1707_v8 = vadd.f32 %v1706_v7, %v1705_v5  ;;  %v1708_v9 = vmul.f32 0.0625, %v1698_v6 }
 0x217   : > { %v1709_v10 = vmul.f32 0.0625, %v1707_v8  ;;  %v1710_v11 = vmul.f32 %v1708_v9, %v1708_v9 }
 0x219   : > { %v1711_v12 = vsub.f32 %v1709_v10, %v1710_v11 }
 0x21b   : > { %v1712_v13 = vmax.f32 %v1711_v12, 0.0 }
 0x21d   : > { %v1714_v14 = vadd.f32 1e-05, %v1712_v13 }
 0x21f   : > { %2519 = vrsqrt.f32 %v1714_v14 }
 0x229   : > { %v2520_v19 = vpop.eup %2519 }
 0x22a   : > { %v1716_v20 = vmul.f32 %v2520_v19, %v1713_v17 }
 0x22c   : > { %v1718_v22 = vmul.f32 %v1716_v20, %v1708_v9  ;;  %v1723_v23 = vrot.slane %v1716_v20, %v1722_v18 }
 0x22e   : > { %v1719_v24 = vsub.f32 %v1717_v21, %v1718_v22  ;;  %v1724_v25 = vmul.f32 %v1723_v23, %v1690_v53  ;;  %v1725_v26 = vmul.f32 %v1723_v23, %v1691_v56 }
 0x230   : > { %v1729_v27 = vrot.slane %v1719_v24, %v1722_v18 }
 0x232   : > { %v1731_v28 = vadd.f32 %v1729_v27, %v1725_v26  ;;  %v1730_v29 = vadd.f32 %v1729_v27, %v1724_v25 }
 0x234   : > { %v1734_v30 = vpack.c.bf16 %v1731_v28, %v1730_v29 }
 0x236   : > { %2305 = vmatmul.mubr.bf16.vlgmr.msra.gmra.mrb[16].mxu0 %v1734_v30 }
 0x308   : > { %1847 = sbr.rel (%p2119_p0) target bundleno = 793 (0x319), region = 60 }
 0x309   : > { %v1833_v32 = vpop.f32.mrb[16].mxu0 }
 0x30a   : > { %v1840_v34 = vadd.f32 %v1833_v32, %v1732_v31  ;;  %v2306_v35 = vpop.f32.mrb[17].mxu0 }
 0x30b   : > { %v1836_v36 = vpop.f32.mrb[18].mxu0 }
 0x30c   : > { %1842 = vst [vmem:[#allocation2] sm:$0xff] %v1840_v34  ;;  %v1841_v37 = vadd.f32 %v1836_v36, %v1733_v33  ;;  %v2307_v38 = vpop.f32.mrb[19].mxu0 }
 0x30e   : > { %1843 = vst [vmem:[#allocation2 + $0x8] sm:$0xff] %v1841_v37 }
 0x313   : > { %v1848_v39 = vld [vmem:[#allocation2] sm:$0xff] }
 0x314   : > { %v1850_v41 = vmax.f32 %v1848_v39, 0.0 }
 0x315   : > { %v1849_v40 = vld [vmem:[#allocation2 + $0x8] sm:$0xff] }
 0x316   : > { %v1851_v42 = vmax.f32 %v1849_v40, 0.0  ;;  %1852 = vst [vmem:[#allocation11] sm:$0xff] %v1850_v41 }
 0x318   : > { %1853 = vst [vmem:[#allocation11 + $0x8] sm:$0xff] %v1851_v42 }
 0x319 PF: > { %p2341_p4 = scmp.eq.s32.totalorder %s2836_s5, 1  ;;  %s2724_s8 = smov [#allocation11]  }
 0x31a   : > { %s1860_s7 = sshll.u32 %s2724_s8, 4  ;;  %s1861_s7 = int_to_ptr.vmem [resolvable:$true] %s1860_s7 }
 0x31b   : > { %s2639_s20 = scalar_lea.vmem %s1861_s7, 256  ;;  %p2646_p12 = scmp.lt.s32.totalorder %s1861_s7, %s1861_s7 }
 0x31c   : > { %p2640_p2 = scmp.ne.s32.totalorder %s1861_s7, %s2639_s20  ;;  %p2647_p3 = scmp.lt.s32.totalorder %s2639_s20, %s2639_s20 }
 0x31e   : > { %p2641_p1 = pnand %p2640_p2, %p2341_p4  ;;  %p2648_p11 = por %p2647_p3, %p2646_p12 }
 0x320   : > { %p2642_p7 = pneg %p2641_p1 }
 0x322   : > { %p2649_p9 = pnand %p2648_p11, %p2642_p7 }
 0x324   : > { %2652 = shalt.err (!%p2649_p9)
}
 0x325   : > { %s2653_s26 = scalar_lea.hbm %s3168_s4, 256 }
 0x326   : > { %p2654_p8 = scmp.ne.s32.totalorder %s3168_s4, %s2653_s26  ;;  %p2659_p13 = scmp.lt.u32.totalorder %s2653_s26, %s3168_s4 }
 0x328   : > { %p2655_p10 = pnand %p2654_p8, %p2341_p4 }
 0x32a   : > { %p2656_p6 = pneg %p2655_p10 }
 0x32c   : > { %p2661_p5 = pnand %p2659_p13, %p2656_p6 }
 0x32e   : > { %2664 = shalt.err (!%p2661_p5)
}
 0x32f   : > { %s2725_s25 = smov 128   ;;  %s2726_s27 = smov 8  }
 0x330   : > { %2321 = dma.vmem_to_hbm [thread:$0]  (%p2341_p4), %s1861_s7, 256, %s3168_s4, [#allocation5], %s2725_s25, %s2725_s25, %s2726_s27  }
 0x331   : > { %2694 = dma.done.wait (%p2341_p4), [#allocation5], 256  }
 0x332   : > { %2696 = vsyncadd (%p2341_p4), [#allocation5], 4294967040 }
 0x333 PF: > { %p19_p0 = scmp.ge.s32.totalorder %s2773_s19, 4   ;;  %s3194_s15 = smov %s2703_s16 }
 0x334   : > { %s3195_s16 = smov %s2707_s17  ;;  %s3196_s17 = smov %s2782_s22 }
 0x335   : > { %s3197_s18 = smov %s2773_s19  ;;  %21 = sbr.rel (!%p19_p0) target bundleno = 7 (0x7), region = 110 }
 0x33c   :  { %1876 = vsyncpa [#allocation4], 1 }
 0x33d   :  { %1878 = vsyncpa [#allocation4 + $0x1], 1 }
 0x33e   :  { %1879 = vsyncpa [#allocation7], 1 }
 0x33f   :  { %1881 = vsyncpa [#allocation7 + $0x1], 1 }
 0x340   :  { %1882 = vsyncpa [#allocation10], 1 }
 0x341   :  { %1884 = vsyncpa [#allocation10 + $0x1], 1 }
 0x342   :  { %1885 = vsyncpa [#allocation5], 1 }
 0x343   :  { %1887 = vsyncpa [#allocation5 + $0x1], 1 }

</bundles_post_ra>
